<compile_context>
chip_gen: v5e
topology: v5e:2x2
jax: 0.10.0
libtpu: 0.0.40
codegen_flags: <defaults>
</compile_context>

<pallas_src>
import functools
import math

import jax
import jax.numpy as jnp
from jax.experimental import pallas as pl
from jax.experimental.pallas import tpu as pltpu


def _round_up(n: int, m: int) -> int:
    return ((n + m - 1) // m) * m


def _make_fused_mlp_kernel(num_layers: int):
    """Kernel body.  All parameter refs are whole arrays resident in VMEM.

    refs (num_layers >= 2):  x, w0, w_rest, b_all, out
    refs (num_layers == 1):  x, w0,         b_all, out
    """

    def kernel(*refs):
        x_ref = refs[0]
        w0_ref = refs[1]
        w_rest_ref = refs[2] if num_layers > 1 else None
        b_ref = refs[-2]
        o_ref = refs[-1]

        # Layer 0: (tm, n_inp) @ (n_inp, P).  Weights are bf16 (native MXU operand);
        # activations cast to bf16 only at the dot, epilogue math stays f32.
        h = x_ref[...]
        acc = jnp.dot(h.astype(jnp.bfloat16), w0_ref[...],
                      preferred_element_type=jnp.float32)      # MXU, f32 accumulate
        h = jnp.maximum(acc + b_ref[0], 0.0)                    # f32 bias + ReLU

        for li in range(1, num_layers):                         # unrolled at trace time
            acc = jnp.dot(h.astype(jnp.bfloat16), w_rest_ref[li - 1],
                          preferred_element_type=jnp.float32)
            h = jnp.maximum(acc + b_ref[li], 0.0)               # ReLU after EVERY layer

        o_ref[...] = h.astype(o_ref.dtype)                      # single lane-dense store

    return kernel


@functools.lru_cache(maxsize=None)
def _build_forward(M, n_inp, n_class, num_layers, P, in_dtype):
    """Build (once per shape) the jitted padded-forward: pad rows -> pallas_call -> slice."""
    itemsize = jnp.dtype(in_dtype).itemsize
    vmem_spec = pl.BlockSpec(memory_space=pltpu.MemorySpace.VMEM)

    use_grid = M >= 1024            # only worth sharding the batch axis at large M (v7x 2 TCs)
    if use_grid:
        tm = 256
        m_pad = _round_up(M, tm)
        grid = (m_pad // tm,)
        x_spec = pl.BlockSpec((tm, n_inp), lambda i: (i, 0))
        out_spec = pl.BlockSpec((tm, P), lambda i: (i, 0))
        w0_spec = pl.BlockSpec((n_inp, P), lambda i: (0, 0))
        wr_spec = pl.BlockSpec((num_layers - 1, P, P), lambda i: (0, 0, 0))
        b_spec = pl.BlockSpec((num_layers, 1, P), lambda i: (0, 0, 0))
        resident = (tm * n_inp * itemsize + n_inp * P * 2
                    + (num_layers - 1) * P * P * 2 + num_layers * P * 4 + tm * P * itemsize)
        compiler_params = pltpu.CompilerParams(
            dimension_semantics=("parallel",),
            vmem_limit_bytes=int(min(max(4 * resident + (2 << 20), 32 << 20), 64 << 20)),
        )
    else:
        m_pad = _round_up(M, 8)
        grid = ()
        x_spec = out_spec = w0_spec = wr_spec = b_spec = vmem_spec
        resident = (m_pad * n_inp * itemsize + n_inp * P * 2
                    + (num_layers - 1) * P * P * 2 + num_layers * P * 4 + m_pad * P * itemsize)
        compiler_params = pltpu.CompilerParams(
            vmem_limit_bytes=int(min(max(4 * resident + (2 << 20), 32 << 20), 64 << 20)),
        )

    in_specs = [x_spec, w0_spec] + ([wr_spec] if num_layers > 1 else []) + [b_spec]

    flops = 2 * m_pad * n_inp * P + 2 * m_pad * P * P * (num_layers - 1)
    bytes_accessed = (m_pad * n_inp * itemsize            # x
                      + n_inp * P * 2                     # w0 (bf16)
                      + (num_layers - 1) * P * P * 2      # packed remaining weights (bf16)
                      + num_layers * P * 4                # biases (f32)
                      + m_pad * P * itemsize)             # out

    call = pl.pallas_call(
        _make_fused_mlp_kernel(num_layers),
        grid=grid,
        out_shape=jax.ShapeDtypeStruct((m_pad, P), in_dtype),
        in_specs=in_specs,
        out_specs=out_spec,
        compiler_params=compiler_params,
        cost_estimate=pl.CostEstimate(flops=flops, transcendentals=0,
                                      bytes_accessed=bytes_accessed),
    )

    def _pad_rows(x):
        if m_pad == M:
            return x
        return jnp.zeros((m_pad, n_inp), x.dtype).at[:M].set(x)

    if num_layers > 1:
        def fwd(x, w0, w_rest, b_all):
            out_p = call(_pad_rows(x), w0, w_rest, b_all)
            return out_p[:M, :n_class]
    else:
        def fwd(x, w0, b_all):
            out_p = call(_pad_rows(x), w0, b_all)
            return out_p[:M, :n_class]

    return jax.jit(fwd)


class MLPPallas:
    """JAX/Pallas re-implementation of the PyTorch MLP module (fully fused forward)."""

    def __init__(self, n_inp, n_feature_list, n_class, key):
        self.n_inp = int(n_inp)
        self.n_class = int(n_class)
        self.num_layers = len(n_feature_list)
        assert self.num_layers >= 1

        # Build per-layer (in, out) dims exactly like the PyTorch loop, and init params
        # mimicking nn.Linear default: U(-1/sqrt(in), 1/sqrt(in)).  Weights stored as W.T
        # of PyTorch's (out, in) layout, i.e. (in, out), so a layer is y = relu(x @ W + b).
        self.params = []
        dims = []
        for idx, num_hidden_units in enumerate(n_feature_list):
            inp = self.n_inp if idx == 0 else n_feature_list[idx - 1]
            out = self.n_class if idx == len(n_feature_list) - 1 else num_hidden_units
            dims.append((inp, out))
            key, kw, kb = jax.random.split(key, 3)
            bound = 1.0 / math.sqrt(inp)
            w = jax.random.uniform(kw, (inp, out), jnp.float32, -bound, bound)
            b = jax.random.uniform(kb, (out,), jnp.float32, -bound, bound)
            self.params.append((w, b))

        # Common padded feature width P (multiple of 128) shared by every feature dim except
        # the layer-0 input, so all remaining weights pack into one (L-1, P, P) tensor.
        feat_dims = [out for (_, out) in dims] + [inp for (inp, _) in dims[1:]]
        self.P = _round_up(max(feat_dims), 128)
        P = self.P

        # Layer-0 weight kept at native K = n_inp (no wrapper-side column pad of x needed).
        w0, _ = self.params[0]
        self.w0 = (jnp.zeros((self.n_inp, P), jnp.float32)
                   .at[:, : w0.shape[1]].set(w0).astype(jnp.bfloat16))

        if self.num_layers > 1:
            w_rest = jnp.zeros((self.num_layers - 1, P, P), jnp.float32)
            for li in range(1, self.num_layers):
                w, _ = self.params[li]
                w_rest = w_rest.at[li - 1, : w.shape[0], : w.shape[1]].set(w)
            self.w_rest = w_rest.astype(jnp.bfloat16)
        else:
            self.w_rest = None

        b_all = jnp.zeros((self.num_layers, 1, P), jnp.float32)
        for li, (_, b) in enumerate(self.params):
            b_all = b_all.at[li, 0, : b.shape[0]].set(b)
        self.b_all = b_all

    def __call__(self, x):
        M, K = x.shape
        assert K == self.n_inp, (K, self.n_inp)
        fwd = _build_forward(M, self.n_inp, self.n_class, self.num_layers, self.P, x.dtype)
        if self.num_layers > 1:
            return fwd(x, self.w0, self.w_rest, self.b_all)
        return fwd(x, self.w0, self.b_all)


if __name__ == "__main__":
    key = jax.random.PRNGKey(0)
    k_model, k_x = jax.random.split(key)

    batch = 8
    n_inp = 32
    n_feature_list = [64, 32]   # last entry's size is never used as a dim (matches PyTorch quirk)
    n_class = 16

    model = MLPPallas(n_inp, n_feature_list, n_class, k_model)
    x = jax.random.normal(k_x, (batch, n_inp), dtype=jnp.float32)

    out = jax.block_until_ready(model(x))
    assert out.shape == (batch, n_class), out.shape
    assert bool(jnp.all(out >= 0.0))     # trailing ReLU applied, as in the PyTorch module

    # Reference 1: identical math to the kernel (bf16 weights / bf16 dot inputs, f32 accum).
    ref_bf16 = x
    for w, b in model.params:
        acc = jnp.dot(ref_bf16.astype(jnp.bfloat16), w.astype(jnp.bfloat16),
                      preferred_element_type=jnp.float32)
        ref_bf16 = jnp.maximum(acc + b, 0.0)
    assert bool(jnp.allclose(out, ref_bf16, atol=1e-3, rtol=1e-3)), \
        float(jnp.max(jnp.abs(out - ref_bf16)))

    # Reference 2: full-f32 PyTorch-equivalent math (loose tolerance: bf16 weight rounding).
    ref_f32 = x
    for w, b in model.params:
        ref_f32 = jnp.maximum(ref_f32 @ w + b, 0.0)
    assert bool(jnp.allclose(out, ref_f32, atol=5e-2, rtol=5e-2))

    print("KERNEL_OK")
</pallas_src>

<mosaic_0001>
module attributes {stable_mosaic.version = 11 : i64} {
  func.func @kernel(%arg0: memref<8x32xf32, #tpu.memory_space<vmem>>, %arg1: memref<32x128xbf16, #tpu.memory_space<vmem>>, %arg2: memref<1x128x128xbf16, #tpu.memory_space<vmem>>, %arg3: memref<2x1x128xf32, #tpu.memory_space<vmem>>, %arg4: memref<8x128xf32, #tpu.memory_space<vmem>>) attributes {dimension_semantics = [], scalar_prefetch = 0 : i64, scratch_operands = 0 : i64, tpu.core_type = #tpu.core_type<tc>} {
    %c0 = arith.constant 0 : index
    %c0_0 = arith.constant 0 : index
    %0 = vector.load %arg0[%c0, %c0_0] : memref<8x32xf32, #tpu.memory_space<vmem>>, vector<8x32xf32>
    %1 = arith.truncf %0 : vector<8x32xf32> to vector<8x32xbf16>
    %c0_1 = arith.constant 0 : index
    %c0_2 = arith.constant 0 : index
    %2 = vector.load %arg1[%c0_1, %c0_2] : memref<32x128xbf16, #tpu.memory_space<vmem>>, vector<32x128xbf16>
    %cst = arith.constant dense<0.000000e+00> : vector<8x128xf32>
    %3 = tpu.matmul %1, %2, %cst {dimension_numbers = #tpu.dot_dimension_numbers<[1], [0], [0], [1], [0, 0, 1, 1], [], []>} : vector<8x32xbf16>, vector<32x128xbf16>, vector<8x128xf32> -> vector<8x128xf32>
    %c0_3 = arith.constant 0 : index
    %c0_4 = arith.constant 0 : index
    %c0_5 = arith.constant 0 : index
    %4 = vector.load %arg3[%c0_3, %c0_4, %c0_5] : memref<2x1x128xf32, #tpu.memory_space<vmem>>, vector<1x1x128xf32>
    %5 = vector.shape_cast %4 : vector<1x1x128xf32> to vector<1x128xf32>
    %6 = vector.broadcast %5 : vector<1x128xf32> to vector<8x128xf32>
    %7 = arith.addf %3, %6 : vector<8x128xf32>
    %cst_6 = arith.constant 0.000000e+00 : f32
    %8 = vector.broadcast %cst_6 : f32 to vector<8x128xf32>
    %9 = arith.maximumf %7, %8 : vector<8x128xf32>
    %10 = arith.truncf %9 : vector<8x128xf32> to vector<8x128xbf16>
    %c0_7 = arith.constant 0 : index
    %c0_8 = arith.constant 0 : index
    %c0_9 = arith.constant 0 : index
    %11 = vector.load %arg2[%c0_7, %c0_8, %c0_9] : memref<1x128x128xbf16, #tpu.memory_space<vmem>>, vector<1x128x128xbf16>
    %12 = vector.shape_cast %11 : vector<1x128x128xbf16> to vector<128x128xbf16>
    %cst_10 = arith.constant dense<0.000000e+00> : vector<8x128xf32>
    %13 = tpu.matmul %10, %12, %cst_10 {dimension_numbers = #tpu.dot_dimension_numbers<[1], [0], [0], [1], [0, 0, 1, 1], [], []>} : vector<8x128xbf16>, vector<128x128xbf16>, vector<8x128xf32> -> vector<8x128xf32>
    %c1 = arith.constant 1 : index
    %c0_11 = arith.constant 0 : index
    %c0_12 = arith.constant 0 : index
    %14 = vector.load %arg3[%c1, %c0_11, %c0_12] : memref<2x1x128xf32, #tpu.memory_space<vmem>>, vector<1x1x128xf32>
    %15 = vector.shape_cast %14 : vector<1x1x128xf32> to vector<1x128xf32>
    %16 = vector.broadcast %15 : vector<1x128xf32> to vector<8x128xf32>
    %17 = arith.addf %13, %16 : vector<8x128xf32>
    %cst_13 = arith.constant 0.000000e+00 : f32
    %18 = vector.broadcast %cst_13 : f32 to vector<8x128xf32>
    %19 = arith.maximumf %17, %18 : vector<8x128xf32>
    %c0_14 = arith.constant 0 : index
    %c0_15 = arith.constant 0 : index
    %20 = vector.load %arg4[%c0_14, %c0_15] : memref<8x128xf32, #tpu.memory_space<vmem>>, vector<8x128xf32>
    tpu.vector_store %arg4[%c0_14, %c0_15], %19 {strides = array<i32>} : memref<8x128xf32, #tpu.memory_space<vmem>>, vector<8x128xf32>,
    return
  }
}

</mosaic_0001>

<bundles_post_ra>
// kernel: fwd.1
= control target key start
LH: loop header
LB: loop body
LE: loop exit
PB: predicated region body
PF: predicated region fallthrough
CT: control target
= control target key end

     0   :  { %9 = vsyncpa [#allocation3], 0  ;;  %s418_s0 = inlined_call_operand.hbm [shape: f32[8,32], index: 0, kind: input, shape index: {}]   ;;  %s419_s1 = inlined_call_operand.hbm [shape: bf16[32,128], index: 1, kind: input, shape index: {}]   ;;  %s420_s2 = inlined_call_operand.hbm [shape: bf16[1,128,128], index: 2, kind: input, shape index: {}]   ;;  %s421_s3 = inlined_call_operand.vmem [shape: f32[2,1,128], index: 3, kind: input, shape index: {}]   ;;  %s422_s4 = inlined_call_operand.hbm [shape: f32[8,128], index: 4, kind: output, shape index: {}]  }
   0x1   :  { %10 = vsyncpa [#allocation6], 0  ;;  %s27_s17 = sshll.u32 %s419_s1, 4  ;;  %s28_s17 = int_to_ptr.hbm [resolvable:$true] %s27_s17 }
   0x2   :  { %11 = vsyncpa [#allocation4], 0  ;;  %s369_s18 = smov [#allocation5]   ;;  %s17_s22 = sshll.u32 %s418_s0, 4  ;;  %s18_s22 = int_to_ptr.hbm [resolvable:$true] %s17_s22 }
   0x3   :  { %s29_s19 = sshll.u32 %s369_s18, 4  ;;  %s370_s23 = smov 64   ;;  %s30_s19 = int_to_ptr.vmem [resolvable:$true] %s29_s19 }
   0x4   :  { %s371_s24 = smov 4   ;;  %s372_s25 = smov [#allocation2]  }
   0x5   :  { %35 = dma.hbm_to_vmem [thread:$0]  %s28_s17, 256, %s30_s19, [#allocation6], %s370_s23, %s370_s23, %s371_s24  }
   0x6   :  { %s19_s26 = sshll.u32 %s372_s25, 4  ;;  %s40_s29 = sshll.u32 %s420_s2, 4  ;;  %s20_s26 = int_to_ptr.vmem [resolvable:$true] %s19_s26  ;;  %s41_s29 = int_to_ptr.hbm [resolvable:$true] %s40_s29 }
   0x7   :  { %22 = dma.hbm_to_vmem [thread:$0]  %s18_s22, 128, %s20_s26, [#allocation3]  }
   0x8   :  { %s373_s1 = smov [#allocation7]  }
   0x9   :  { %s42_s30 = sshll.u32 %s373_s1, 4  ;;  %s43_s30 = int_to_ptr.vmem [resolvable:$true] %s42_s30 }
   0xa   :  { %48 = dma.hbm_to_vmem [thread:$0]  %s41_s29, 1024, %s43_s30, [#allocation6], %s370_s23, %s370_s23, %s371_s24  }
   0xb   :  { %363 = dma.done.wait [#allocation3], 128  }
   0xc   :  { %364 = vsyncadd [#allocation3], 4294967168 }
   0xd   :  { %365 = dma.done.wait [#allocation6], 1280  }
   0xe   :  { %366 = vsyncadd [#allocation6], 4294966016  ;;  %v250_v0 = vld [vmem:[#allocation5 + $0x8] sm:$0xff]  ;;  %v249_v2 = vld [vmem:[#allocation5] sm:$0xff]  ;;  %vm86_vm0 = vcmask 261120   ;;  %s374_s7 = smov [#allocation8]  }
   0xf   :  { %v258_v1 = vld [vmem:[#allocation7 + $0x38] sm:$0xff]  ;;  %96 = vmatpush.bf16.msra.mxu0 %v250_v0  ;;  %v64_v3 = vld [vmem:[#allocation2] sm:$0xff]  ;;  %v257_v4 = vld [vmem:[#allocation7 + $0x30] sm:$0xff]  ;;  %s194_s8 = sshll.u32 %s374_s7, 4  ;;  %s196_s11 = sshll.u32 %s422_s4, 4  ;;  %s195_s8 = int_to_ptr.vmem [resolvable:$true] %s194_s8  ;;  %s197_s11 = int_to_ptr.hbm [resolvable:$true] %s196_s11 }
  0x10   :  { %174 = vmatpush.bf16.msra.mxu1 %v258_v1  ;;  %v65_v5 = vpack.c.bf16 %v64_v3, %v64_v3  ;;  %v256_v6 = vld [vmem:[#allocation7 + $0x28] sm:$0xff]  ;;  %v255_v7 = vld [vmem:[#allocation7 + $0x20] sm:$0xff]  ;;  %v254_v8 = vld [vmem:[#allocation7 + $0x18] sm:$0xff] }
  0x11   :  { %v253_v9 = vld [vmem:[#allocation7 + $0x10] sm:$0xff]  ;;  %v252_v10 = vld [vmem:[#allocation7 + $0x8] sm:$0xff]  ;;  %v251_v11 = vld [vmem:[#allocation7] sm:$0xff] }
  0x12   :  { %v265_v12 = vld [vmem:[%s421_s3] ss:$0 sm:$0xff]  ;;  %v266_v18 = vld [vmem:[%s421_s3 + $0x1] ss:$0 sm:$0xff] }
  0x13   :  { %97 = vmatpush.bf16.msra.mxu0 %v249_v2 }
  0x14   :  { %175 = vmatpush.bf16.msra.mxu1 %v257_v4 }
  0x16   :  { %215 = vmatmul.msk.bf16.vlgmr.msra.gmra.mxu0 %vm86_vm0, %v65_v5 }
  0x18   :  { %176 = vmatpush.bf16.msra.mxu1 %v256_v6 }
  0x1c   :  { %177 = vmatpush.bf16.msra.mxu1 %v255_v7 }
  0x20   :  { %178 = vmatpush.bf16.msra.mxu1 %v254_v8 }
  0x24   :  { %179 = vmatpush.bf16.msra.mxu1 %v253_v9 }
  0x28   :  { %180 = vmatpush.bf16.msra.mxu1 %v252_v10 }
  0x2c   :  { %181 = vmatpush.bf16.msra.mxu1 %v251_v11 }
  0x93   :  { %v99_v13 = vpop.f32.mrf.mxu0 }
  0x94   :  { %v100_v14 = vadd.f32 %v265_v12, %v99_v13 }
  0x96   :  { %v103_v15 = vmax.f32 %v100_v14, 0.0 }
  0x98   :  { %v104_v16 = vpack.c.bf16 %v103_v15, %v103_v15 }
  0x9a   :  { %182 = vmatmul.bf16.vlgmr.msra.gmra.mxu1 %v104_v16 }
  0x9b   :  { %v101_v17 = vpop.f32.mrf.mxu0 }
 0x117   :  { %v183_v19 = vpop.f32.mrf.mxu1 }
 0x118   :  { %v184_v20 = vadd.f32 %v266_v18, %v183_v19 }
 0x11a   :  { %v187_v21 = vmax.f32 %v184_v20, 0.0 }
 0x11c   :  { %188 = vst [vmem:[#allocation8] sm:$0xff] %v187_v21 }
 0x11d   :  { %199 = dma.vmem_to_hbm [thread:$0]  %s195_s8, 128, %s197_s11, [#allocation4]  }
 0x11f   :  { %v185_v22 = vpop.f32.mrf.mxu1 }
 0x120   :  { %367 = dma.done.wait [#allocation4], 128  }
 0x121   :  { %368 = vsyncadd [#allocation4], 4294967168 }
 0x122   :  { %204 = vsyncpa [#allocation3], 1 }
 0x123   :  { %205 = vsyncpa [#allocation6], 1 }
 0x124   :  { %206 = vsyncpa [#allocation4], 1 }

</bundles_post_ra>
